<compile_context>
chip_gen: v7x
topology: tpu7x:2x2x1
jax: 0.10.0
libtpu: 0.0.40
codegen_flags: <defaults>
</compile_context>

<pallas_src>
import jax
import jax.numpy as jnp
from jax.experimental import pallas as pl
from jax.experimental.pallas import tpu as pltpu


def omp_predictor_kernel(x_ref, wemb_ref, bemb_ref, wbb_ref, bbb_ref,
                         cls_ec_ref, cls_proj_ref, cls_bias_ref,
                         logit_ref, bbox_ref, att_ref):
    # x_ref:        (TP, Cin, HW)  -- NCHW flattened; channels on sublane, spatial on lane
    # wemb_ref:     (Cin, E)       -- emb_pred.weight.T
    # bemb_ref:     (1, E)         -- emb_pred.bias
    # wbb_ref:      (Cin, NB)      -- bbox_pred.weight.T
    # bbb_ref:      (1, NB)        -- bbox_pred.bias
    # cls_ec_ref:   (E, C)         -- cls_score.T (for logits)
    # cls_proj_ref: (C, Cin)       -- cls_score @ emb_pred.weight   (fused attention weights)
    # cls_bias_ref: (C, 1)         -- cls_score @ emb_pred.bias     (fused attention bias)
    x = x_ref[...]                                                  # (TP, Cin, HW)

    # Global average pool over spatial positions (lane-axis reduction).
    pooled = jnp.mean(x, axis=-1)                                   # (TP, Cin)

    # cls_emb = emb_pred(pooled); cls_logit = cls_emb @ cls_score^T
    cls_emb = (jnp.dot(pooled, wemb_ref[...], preferred_element_type=jnp.float32)
               + bemb_ref[...])                                     # (TP, E)
    logits = jnp.dot(cls_emb, cls_ec_ref[...],
                     preferred_element_type=jnp.float32)            # (TP, C)
    logit_ref[...] = logits

    # bbox_pred = bbox_pred(pooled)
    bbox_ref[...] = (jnp.dot(pooled, wbb_ref[...], preferred_element_type=jnp.float32)
                     + bbb_ref[...])                                # (TP, NB)

    # argmax over classes (first-max tie-break, matching torch.argmax) -> one-hot.
    num_cls = logits.shape[-1]
    max_val = jnp.max(logits, axis=-1, keepdims=True)               # (TP, 1)
    col = jax.lax.broadcasted_iota(jnp.int32, logits.shape, 1)      # (TP, C)
    idx = jnp.min(jnp.where(logits == max_val, col, num_cls),
                  axis=-1, keepdims=True)                           # (TP, 1)
    onehot = (col == idx).astype(jnp.float32)                       # (TP, C)

    # Fused attention:  att[p, s] = sum_c x[p, c, s] * v[p, c] + bconst[p]
    v = jnp.dot(onehot, cls_proj_ref[...],
                preferred_element_type=jnp.float32)                 # (TP, Cin)
    bconst = jnp.dot(onehot, cls_bias_ref[...],
                     preferred_element_type=jnp.float32)            # (TP, 1)
    att = jnp.sum(v[:, :, None] * x, axis=1) + bconst               # (TP, HW)
    att_ref[...] = att


def omp_fast_rcnn_predictor(x_nchw, w_emb, b_emb, w_bbox, b_bbox, cls_score, *, tp=8):
    """x_nchw: (P, Cin, H, W); w_emb: (E, Cin); b_emb: (E,);
       w_bbox: (NB, Cin); b_bbox: (NB,); cls_score: (C, E)."""
    P, Cin, H, W = x_nchw.shape
    E = w_emb.shape[0]
    NB = w_bbox.shape[0]
    C = cls_score.shape[0]
    HW = H * W

    tp = min(tp, P) if P < tp else tp
    # Pad proposal count to a multiple of tp (keeps sublane dims 8-aligned when tp=8).
    n_steps = pl.cdiv(P, tp)
    P_pad = n_steps * tp

    # Free row-major flatten (no NHWC transpose, no HBM copy of x).
    x_flat = x_nchw.reshape(P, Cin, HW)
    if P_pad != P:
        x_flat = jnp.pad(x_flat, ((0, P_pad - P), (0, 0), (0, 0)))

    # One-time weight prep (orientations the kernel consumes directly).
    w_emb_t = w_emb.T                                   # (Cin, E)
    b_emb_2d = b_emb.reshape(1, E)
    w_bbox_t = w_bbox.T                                 # (Cin, NB)
    b_bbox_2d = b_bbox.reshape(1, NB)
    cls_ec = cls_score.T                                # (E, C)
    cls_proj = cls_score @ w_emb                        # (C, Cin)  == cls_score @ emb_pred.weight
    cls_bias = (cls_score @ b_emb).reshape(C, 1)        # (C, 1)

    out_shapes = (
        jax.ShapeDtypeStruct((P_pad, C), jnp.float32),
        jax.ShapeDtypeStruct((P_pad, NB), jnp.float32),
        jax.ShapeDtypeStruct((P_pad, HW), jnp.float32),
    )

    grid = (n_steps,)
    in_specs = [
        pl.BlockSpec((tp, Cin, HW), lambda p: (p, 0, 0)),   # x: TP proposals per step
        pl.BlockSpec((Cin, E), lambda p: (0, 0)),           # emb weight (transposed)
        pl.BlockSpec((1, E), lambda p: (0, 0)),             # emb bias
        pl.BlockSpec((Cin, NB), lambda p: (0, 0)),          # bbox weight (transposed)
        pl.BlockSpec((1, NB), lambda p: (0, 0)),            # bbox bias
        pl.BlockSpec((E, C), lambda p: (0, 0)),             # cls_score^T   (logits)
        pl.BlockSpec((C, Cin), lambda p: (0, 0)),           # cls_score @ W_emb (fused att)
        pl.BlockSpec((C, 1), lambda p: (0, 0)),             # cls_score @ b_emb (fused att)
    ]
    out_specs = (
        pl.BlockSpec((tp, C), lambda p: (p, 0)),
        pl.BlockSpec((tp, NB), lambda p: (p, 0)),
        pl.BlockSpec((tp, HW), lambda p: (p, 0)),
    )

    cls_logit, bbox_pred, att_flat = pl.pallas_call(
        omp_predictor_kernel,
        out_shape=out_shapes,
        grid=grid,
        in_specs=in_specs,
        out_specs=out_specs,
        compiler_params=pltpu.CompilerParams(
            dimension_semantics=("parallel",)),
    )(x_flat, w_emb_t, b_emb_2d, w_bbox_t, b_bbox_2d, cls_ec, cls_proj, cls_bias)

    att_map = att_flat[:P].reshape(P, H, W)
    return cls_logit[:P], bbox_pred[:P], att_map


def reference_forward(x_nchw, w_emb, b_emb, w_bbox, b_bbox, cls_score):
    """Pure-JAX mirror of the PyTorch forward (unfused)."""
    pooled = jnp.mean(x_nchw, axis=(2, 3))                      # (P, Cin)
    cls_emb = pooled @ w_emb.T + b_emb                          # (P, E)
    cls_logit = jnp.einsum('pe,ce->pc', cls_emb, cls_score)     # (P, C)
    bbox_pred = pooled @ w_bbox.T + b_bbox                      # (P, NB)
    idx_cls = jnp.argmax(cls_logit, axis=-1)                    # (P,)
    x_nhwc = jnp.transpose(x_nchw, (0, 2, 3, 1))                # (P, H, W, Cin)
    att_emb = x_nhwc @ w_emb.T + b_emb                          # (P, H, W, E)
    att_map = jnp.einsum('phwe,pe->phw', att_emb, cls_score[idx_cls])
    return cls_logit, bbox_pred, att_map


if __name__ == "__main__":
    # Small shapes consistent with the module: P proposals, Cin feature channels, HxW RoI map,
    # E embedding dim, C classes, cls-agnostic bbox reg -> 2*4 = 8 outputs.
    # P=16 with TP=8 gives a 2-step grid (keeps both v7x TensorCores busy).
    P, Cin, H, W = 16, 32, 8, 8
    E, C = 16, 8

    key = jax.random.PRNGKey(0)
    k_x, k_we, k_be, k_wb, k_bb, k_cls = jax.random.split(key, 6)

    x = jax.random.normal(k_x, (P, Cin, H, W), dtype=jnp.float32)
    # emb_pred: Linear(Cin, E) -> weight (E, Cin) ~ N(0, 0.01); bias is learnable (nonzero here
    # to exercise the fused bias path).
    w_emb = 0.01 * jax.random.normal(k_we, (E, Cin), dtype=jnp.float32)
    b_emb = 0.01 * jax.random.normal(k_be, (E,), dtype=jnp.float32)
    # bbox_pred: Linear(Cin, 8) -> weight (8, Cin) ~ N(0, 0.001)
    w_bbox = 0.001 * jax.random.normal(k_wb, (8, Cin), dtype=jnp.float32)
    b_bbox = 0.001 * jax.random.normal(k_bb, (8,), dtype=jnp.float32)
    # cls_score: class embedding matrix set via set_class_embeddings, shape (C, E)
    cls_score = jax.random.normal(k_cls, (C, E), dtype=jnp.float32)

    cls_logit, bbox_pred, att_map = omp_fast_rcnn_predictor(
        x, w_emb, b_emb, w_bbox, b_bbox, cls_score, tp=8)
    jax.block_until_ready((cls_logit, bbox_pred, att_map))

    # Correctness check against a pure-JAX reference of the PyTorch forward.
    ref_logit, ref_bbox, ref_att = reference_forward(
        x, w_emb, b_emb, w_bbox, b_bbox, cls_score)
    assert cls_logit.shape == (P, C) and bbox_pred.shape == (P, 8) and att_map.shape == (P, H, W)
    assert jnp.allclose(cls_logit, ref_logit, atol=1e-5, rtol=1e-4)
    assert jnp.allclose(bbox_pred, ref_bbox, atol=1e-5, rtol=1e-4)
    # Attention path is algebraically fused (reassociated matmul) -> slightly looser tolerance.
    assert jnp.allclose(att_map, ref_att, atol=1e-4, rtol=1e-4)

    print("KERNEL_OK")
</pallas_src>

<mosaic_0001>
module attributes {stable_mosaic.version = 11 : i64} {
  func.func @omp_predictor_kernel(%arg0: i32, %arg1: memref<8x32x64xf32, #tpu.memory_space<vmem>>, %arg2: memref<32x16xf32, #tpu.memory_space<vmem>>, %arg3: memref<1x16xf32, #tpu.memory_space<vmem>>, %arg4: memref<32x8xf32, #tpu.memory_space<vmem>>, %arg5: memref<1x8xf32, #tpu.memory_space<vmem>>, %arg6: memref<16x8xf32, #tpu.memory_space<vmem>>, %arg7: memref<8x32xf32, #tpu.memory_space<vmem>>, %arg8: memref<8x1xf32, #tpu.memory_space<vmem>>, %arg9: memref<8x8xf32, #tpu.memory_space<vmem>>, %arg10: memref<8x8xf32, #tpu.memory_space<vmem>>, %arg11: memref<8x64xf32, #tpu.memory_space<vmem>>) attributes {dimension_semantics = [#tpu.dimension_semantics<parallel>], iteration_bounds = array<i64: 2>, scalar_prefetch = 0 : i64, scratch_operands = 0 : i64, tpu.core_type = #tpu.core_type<tc>, window_params = [{transform_indices = @transform_0, window_bounds = array<i64: 8, 32, 64>}, {pipeline_mode = #tpu.pipeline_mode<synchronous>, transform_indices = @transform_1, window_bounds = array<i64: 32, 16>}, {pipeline_mode = #tpu.pipeline_mode<synchronous>, transform_indices = @transform_2, window_bounds = array<i64: 1, 16>}, {pipeline_mode = #tpu.pipeline_mode<synchronous>, transform_indices = @transform_3, window_bounds = array<i64: 32, 8>}, {pipeline_mode = #tpu.pipeline_mode<synchronous>, transform_indices = @transform_4, window_bounds = array<i64: 1, 8>}, {pipeline_mode = #tpu.pipeline_mode<synchronous>, transform_indices = @transform_5, window_bounds = array<i64: 16, 8>}, {pipeline_mode = #tpu.pipeline_mode<synchronous>, transform_indices = @transform_6, window_bounds = array<i64: 8, 32>}, {pipeline_mode = #tpu.pipeline_mode<synchronous>, transform_indices = @transform_7, window_bounds = array<i64: 8, 1>}, {transform_indices = @transform_8, window_bounds = array<i64: 8, 8>}, {transform_indices = @transform_9, window_bounds = array<i64: 8, 8>}, {transform_indices = @transform_10, window_bounds = array<i64: 8, 64>}]} {
    %c0 = arith.constant 0 : index
    %c0_0 = arith.constant 0 : index
    %c0_1 = arith.constant 0 : index
    %0 = vector.load %arg1[%c0, %c0_0, %c0_1] : memref<8x32x64xf32, #tpu.memory_space<vmem>>, vector<8x32x64xf32>
    %cst = arith.constant dense<0.000000e+00> : vector<8x32xf32>
    %1 = vector.multi_reduction <add>, %0, %cst [2] : vector<8x32x64xf32> to vector<8x32xf32>
    %cst_2 = arith.constant 6.400000e+01 : f32
    %2 = vector.broadcast %cst_2 : f32 to vector<8x32xf32>
    %3 = arith.divf %1, %2 : vector<8x32xf32>
    %c0_3 = arith.constant 0 : index
    %c0_4 = arith.constant 0 : index
    %4 = vector.load %arg2[%c0_3, %c0_4] : memref<32x16xf32, #tpu.memory_space<vmem>>, vector<32x16xf32>
    %cst_5 = arith.constant dense<0.000000e+00> : vector<8x16xf32>
    %5 = tpu.matmul %3, %4, %cst_5 {dimension_numbers = #tpu.dot_dimension_numbers<[1], [0], [0], [1], [0, 0, 1, 1], [], []>} : vector<8x32xf32>, vector<32x16xf32>, vector<8x16xf32> -> vector<8x16xf32>
    %c0_6 = arith.constant 0 : index
    %c0_7 = arith.constant 0 : index
    %6 = vector.load %arg3[%c0_6, %c0_7] : memref<1x16xf32, #tpu.memory_space<vmem>>, vector<1x16xf32>
    %7 = vector.broadcast %6 : vector<1x16xf32> to vector<8x16xf32>
    %8 = arith.addf %5, %7 : vector<8x16xf32>
    %c0_8 = arith.constant 0 : index
    %c0_9 = arith.constant 0 : index
    %9 = vector.load %arg6[%c0_8, %c0_9] : memref<16x8xf32, #tpu.memory_space<vmem>>, vector<16x8xf32>
    %cst_10 = arith.constant dense<0.000000e+00> : vector<8x8xf32>
    %10 = tpu.matmul %8, %9, %cst_10 {dimension_numbers = #tpu.dot_dimension_numbers<[1], [0], [0], [1], [0, 0, 1, 1], [], []>} : vector<8x16xf32>, vector<16x8xf32>, vector<8x8xf32> -> vector<8x8xf32>
    %c0_11 = arith.constant 0 : index
    %c0_12 = arith.constant 0 : index
    %11 = vector.load %arg9[%c0_11, %c0_12] : memref<8x8xf32, #tpu.memory_space<vmem>>, vector<8x8xf32>
    tpu.vector_store %arg9[%c0_11, %c0_12], %10 {strides = array<i32>} : memref<8x8xf32, #tpu.memory_space<vmem>>, vector<8x8xf32>,
    %c0_13 = arith.constant 0 : index
    %c0_14 = arith.constant 0 : index
    %12 = vector.load %arg4[%c0_13, %c0_14] : memref<32x8xf32, #tpu.memory_space<vmem>>, vector<32x8xf32>
    %cst_15 = arith.constant dense<0.000000e+00> : vector<8x8xf32>
    %13 = tpu.matmul %3, %12, %cst_15 {dimension_numbers = #tpu.dot_dimension_numbers<[1], [0], [0], [1], [0, 0, 1, 1], [], []>} : vector<8x32xf32>, vector<32x8xf32>, vector<8x8xf32> -> vector<8x8xf32>
    %c0_16 = arith.constant 0 : index
    %c0_17 = arith.constant 0 : index
    %14 = vector.load %arg5[%c0_16, %c0_17] : memref<1x8xf32, #tpu.memory_space<vmem>>, vector<1x8xf32>
    %15 = vector.broadcast %14 : vector<1x8xf32> to vector<8x8xf32>
    %16 = arith.addf %13, %15 : vector<8x8xf32>
    %c0_18 = arith.constant 0 : index
    %c0_19 = arith.constant 0 : index
    %17 = vector.load %arg10[%c0_18, %c0_19] : memref<8x8xf32, #tpu.memory_space<vmem>>, vector<8x8xf32>
    tpu.vector_store %arg10[%c0_18, %c0_19], %16 {strides = array<i32>} : memref<8x8xf32, #tpu.memory_space<vmem>>, vector<8x8xf32>,
    %cst_20 = arith.constant dense<0xFF800000> : vector<8xf32>
    %18 = vector.multi_reduction <maximumf>, %10, %cst_20 [1] : vector<8x8xf32> to vector<8xf32>
    %19 = vector.shape_cast %18 : vector<8xf32> to vector<8x1xf32>
    %20 = tpu.iota {dimensions = array<i32: 1>} : vector<8x8xi32>
    %21 = vector.broadcast %19 : vector<8x1xf32> to vector<8x8xf32>
    %22 = arith.cmpf oeq, %10, %21 : vector<8x8xf32>
    %c8_i32 = arith.constant 8 : i32
    %23 = vector.broadcast %c8_i32 : i32 to vector<8x8xi32>
    %24 = arith.select %22, %20, %23 : vector<8x8xi1>, vector<8x8xi32>
    %cst_21 = arith.constant dense<2147483647> : vector<8xi32>
    %25 = vector.multi_reduction <minsi>, %24, %cst_21 [1] : vector<8x8xi32> to vector<8xi32>
    %26 = vector.shape_cast %25 : vector<8xi32> to vector<8x1xi32>
    %27 = vector.broadcast %26 : vector<8x1xi32> to vector<8x8xi32>
    %28 = arith.cmpi eq, %20, %27 : vector<8x8xi32>
    %29 = arith.extui %28 : vector<8x8xi1> to vector<8x8xi32>
    %30 = arith.sitofp %29 : vector<8x8xi32> to vector<8x8xf32>
    %c0_22 = arith.constant 0 : index
    %c0_23 = arith.constant 0 : index
    %31 = vector.load %arg7[%c0_22, %c0_23] : memref<8x32xf32, #tpu.memory_space<vmem>>, vector<8x32xf32>
    %cst_24 = arith.constant dense<0.000000e+00> : vector<8x32xf32>
    %32 = tpu.matmul %30, %31, %cst_24 {dimension_numbers = #tpu.dot_dimension_numbers<[1], [0], [0], [1], [0, 0, 1, 1], [], []>} : vector<8x8xf32>, vector<8x32xf32>, vector<8x32xf32> -> vector<8x32xf32>
    %c0_25 = arith.constant 0 : index
    %c0_26 = arith.constant 0 : index
    %33 = vector.load %arg8[%c0_25, %c0_26] : memref<8x1xf32, #tpu.memory_space<vmem>>, vector<8x1xf32>
    %cst_27 = arith.constant dense<0.000000e+00> : vector<8x1xf32>
    %34 = tpu.matmul %30, %33, %cst_27 {dimension_numbers = #tpu.dot_dimension_numbers<[1], [0], [0], [1], [0, 0, 1, 1], [], []>} : vector<8x8xf32>, vector<8x1xf32>, vector<8x1xf32> -> vector<8x1xf32>
    %35 = vector.shape_cast %32 : vector<8x32xf32> to vector<8x32x1xf32>
    %36 = vector.broadcast %35 : vector<8x32x1xf32> to vector<8x32x64xf32>
    %37 = arith.mulf %36, %0 : vector<8x32x64xf32>
    %cst_28 = arith.constant dense<0.000000e+00> : vector<8x64xf32>
    %38 = vector.multi_reduction <add>, %37, %cst_28 [1] : vector<8x32x64xf32> to vector<8x64xf32>
    %39 = vector.broadcast %34 : vector<8x1xf32> to vector<8x64xf32>
    %40 = arith.addf %38, %39 : vector<8x64xf32>
    %c0_29 = arith.constant 0 : index
    %c0_30 = arith.constant 0 : index
    %41 = vector.load %arg11[%c0_29, %c0_30] : memref<8x64xf32, #tpu.memory_space<vmem>>, vector<8x64xf32>
    tpu.vector_store %arg11[%c0_29, %c0_30], %40 {strides = array<i32>} : memref<8x64xf32, #tpu.memory_space<vmem>>, vector<8x64xf32>,
    return
  }
  func.func @transform_0(%arg0: i32) -> (i32, i32, i32) {
    %c0_i32 = arith.constant 0 : i32
    %c0_i32_0 = arith.constant 0 : i32
    %c0_i32_1 = arith.constant 0 : i32
    return %arg0, %c0_i32, %c0_i32_0 : i32, i32, i32
  }
  func.func @transform_1(%arg0: i32) -> (i32, i32) {
    %c0_i32 = arith.constant 0 : i32
    %c0_i32_0 = arith.constant 0 : i32
    %c0_i32_1 = arith.constant 0 : i32
    return %c0_i32, %c0_i32_0 : i32, i32
  }
  func.func @transform_2(%arg0: i32) -> (i32, i32) {
    %c0_i32 = arith.constant 0 : i32
    %c0_i32_0 = arith.constant 0 : i32
    %c0_i32_1 = arith.constant 0 : i32
    return %c0_i32, %c0_i32_0 : i32, i32
  }
  func.func @transform_3(%arg0: i32) -> (i32, i32) {
    %c0_i32 = arith.constant 0 : i32
    %c0_i32_0 = arith.constant 0 : i32
    %c0_i32_1 = arith.constant 0 : i32
    return %c0_i32, %c0_i32_0 : i32, i32
  }
  func.func @transform_4(%arg0: i32) -> (i32, i32) {
    %c0_i32 = arith.constant 0 : i32
    %c0_i32_0 = arith.constant 0 : i32
    %c0_i32_1 = arith.constant 0 : i32
    return %c0_i32, %c0_i32_0 : i32, i32
  }
  func.func @transform_5(%arg0: i32) -> (i32, i32) {
    %c0_i32 = arith.constant 0 : i32
    %c0_i32_0 = arith.constant 0 : i32
    %c0_i32_1 = arith.constant 0 : i32
    return %c0_i32, %c0_i32_0 : i32, i32
  }
  func.func @transform_6(%arg0: i32) -> (i32, i32) {
    %c0_i32 = arith.constant 0 : i32
    %c0_i32_0 = arith.constant 0 : i32
    %c0_i32_1 = arith.constant 0 : i32
    return %c0_i32, %c0_i32_0 : i32, i32
  }
  func.func @transform_7(%arg0: i32) -> (i32, i32) {
    %c0_i32 = arith.constant 0 : i32
    %c0_i32_0 = arith.constant 0 : i32
    %c0_i32_1 = arith.constant 0 : i32
    return %c0_i32, %c0_i32_0 : i32, i32
  }
  func.func @transform_8(%arg0: i32) -> (i32, i32) {
    %c0_i32 = arith.constant 0 : i32
    %c0_i32_0 = arith.constant 0 : i32
    return %arg0, %c0_i32 : i32, i32
  }
  func.func @transform_9(%arg0: i32) -> (i32, i32) {
    %c0_i32 = arith.constant 0 : i32
    %c0_i32_0 = arith.constant 0 : i32
    return %arg0, %c0_i32 : i32, i32
  }
  func.func @transform_10(%arg0: i32) -> (i32, i32) {
    %c0_i32 = arith.constant 0 : i32
    %c0_i32_0 = arith.constant 0 : i32
    return %arg0, %c0_i32 : i32, i32
  }
}

</mosaic_0001>

<bundles_post_ra>
// kernel: tpu_custom_call.1
= control target key start
LH: loop header
LB: loop body
LE: loop exit
PB: predicated region body
PF: predicated region fallthrough
CT: control target
= control target key end

     0   :  { %16 = vsyncpa [#allocation3], 0  ;;  %s2555_s0 = inlined_call_operand.hbm [shape: f32[16,32,64], index: 0, kind: input, shape index: {}]   ;;  %s2556_s1 = inlined_call_operand.vmem [shape: f32[32,16], index: 1, kind: input, shape index: {}]   ;;  %s2557_s2 = inlined_call_operand.vmem [shape: f32[1,16], index: 2, kind: input, shape index: {}]   ;;  %s2558_s3 = inlined_call_operand.vmem [shape: f32[32,8], index: 3, kind: input, shape index: {}]   ;;  %s2559_s4 = inlined_call_operand.vmem [shape: f32[1,8], index: 4, kind: input, shape index: {}]   ;;  %s2560_s5 = inlined_call_operand.vmem [shape: f32[16,8], index: 5, kind: input, shape index: {}]   ;;  %s2561_s6 = inlined_call_operand.vmem [shape: f32[8,32], index: 6, kind: input, shape index: {}]   ;;  %s2562_s7 = inlined_call_operand.vmem [shape: f32[8,1], index: 7, kind: input, shape index: {}]   ;;  %s2563_s8 = inlined_call_operand.vmem [shape: f32[16,8], index: 8, kind: output, shape index: {0}]   ;;  %s2564_s9 = inlined_call_operand.vmem [shape: f32[16,8], index: 9, kind: output, shape index: {1}]   ;;  %s2565_s10 = inlined_call_operand.hbm [shape: f32[16,64], index: 10, kind: output, shape index: {2}]  }
   0x1   :  { %18 = vsyncpa [#allocation3 + $0x1], 0 }
   0x2   :  { %19 = vsyncpa [#allocation4], 0 }
   0x3   :  { %21 = vsyncpa [#allocation4 + $0x1], 0  ;;  %s1978_s13 = smov 0   ;;  %s1980_s14 = smov 0  }
   0x4   :  { %s1982_s15 = smov 0   ;;  %s1984_s16 = smov 0  }
   0x5 LB: > { %s1999_s17 = sadd.s32 4294967295, %s1913_s16   ;;  %s1666_s18 = sadd.s32 4294967294, %s1913_s16   ;;  %s1913_s16 = sphi %s1984_s16, %s2612_s16   ;;  %s1909_s15 = sphi %s1982_s15, %s2611_s15   ;;  %s1905_s14 = sphi %s1980_s14, %s2610_s14   ;;  %s1901_s13 = sphi %s1978_s13, %s2609_s13  }
   0x6   : > { %s2003_s19 = sadd.s32 1, %s1913_s16   ;;  %s34_s20 = sadd.s32 1, %s1909_s15 }
   0x7   : > { %s31_s21 = ssub.s32 %s1913_s16, %s2003_s19  ;;  %p41_p0 = scmp.ne.s32.totalorder %s1909_s15, %s1905_s14 }
   0x8   : > { %p32_p1 = scmp.eq.s32.totalorder %s31_s21, 0  ;;  %p42_p2 = scmp.eq.s32.totalorder %s1913_s16, 0 }
   0x9   : > { %p47_p3 = scmp.ne.s32.totalorder %s1905_s14, %s1901_s13  ;;  %p48_p4 = scmp.eq.s32.totalorder %s1999_s17, 0 }
   0xa   : > { %s2015_s22 = scalar_select %p32_p1, %s1909_s15, %s34_s20  }
   0xb   : > { %p2017_p5 = por %p42_p2, %p41_p0  ;;  %p2021_p6 = por %p48_p4, %p47_p3 }
   0xc   : > { %2579 = sst [smem:[#allocation8_spill]] %s2015_s22  ;;  %p270_p7 = scmp.eq.s32.totalorder %s1999_s17, 1 }
   0xd   : > { %p276_p8 = scmp.eq.s32.totalorder %s1666_s18, 1  ;;  %p1775_p10 = scmp.lt.s32.totalorder %s1913_s16, 2 }
   0xe   : > { %p2028_p11 = por %p270_p7, %p41_p0  ;;  %s317_s27 = sand.u32 1, %s1909_s15  }
   0xf   : > { %p2032_p12 = por %p276_p8, %p47_p3  ;;  %s1691_s28 = sshll.u32 %s1913_s16, 12 }
  0x10   : > { %s2582_s25 = scalar_select %p2028_p11, 1, 0 }
  0x11   : > { %s2583_s26 = scalar_select %p2032_p12, 1, 0 }
  0x12   : > { %s1669_s29 = sshll.u32 %s317_s27, 8  ;;  %s2041_s12 = scalar_lea.hbm %s2555_s0, %s1691_s28 }
  0x13   : > { %s321_s18 = scalar_lea.vmem [#allocation2], %s1669_s29  ;;  %p2045_p13 = pnand %p1775_p10, %p2017_p5 }
  0x14   : > { %s329_s20 = sshll.u32 %s321_s18, 4  ;;  %s2051_s22 = scalar_lea.sflag [#allocation3], %s317_s27  ;;  %s2049_s20 = int_to_ptr.vmem [resolvable:$true] %s329_s20 }
  0x15   : > { %s1817_s30 = scalar_lea.hbm %s2041_s12, 4096  ;;  %p1819_p1 = pneg %p2045_p13 }
  0x16   : > { %p1818_p0 = scmp.ne.s32.totalorder %s2041_s12, %s1817_s30  ;;  %s1822_s29 = scalar_lea.hbm %s2555_s0, 8192 }
  0x17   : > { %p1823_p4 = scmp.lt.u32.totalorder %s2041_s12, %s2555_s0  ;;  %p1824_p5 = scmp.lt.u32.totalorder %s1822_s29, %s1817_s30 }
  0x18   : > { %p1820_p2 = pnand %p1819_p1, %p1818_p0  ;;  %p1826_p8 = scmp.lt.u32.totalorder %s1817_s30, %s2041_s12 }
  0x19   : > { %p1825_p7 = por %p1824_p5, %p1823_p4 }
  0x1a   : > { %p1821_p3 = pneg %p1820_p2 }
  0x1b   : > { %p1827_p10 = por %p1826_p8, %p1825_p7 }
  0x1d   : > { %p1828_p9 = pnand %p1827_p10, %p1821_p3 }
  0x1f   : > { %1831 = shalt.err (!%p1828_p9)
}
  0x20   : > { %s1832_s27 = scalar_lea.vmem %s2049_s20, 4096  ;;  %s1915_s28 = smov [#allocation2]  }
  0x21   : > { %p1833_p0 = scmp.ne.s32.totalorder %s2049_s20, %s1832_s27  ;;  %s1837_s23 = sshll.u32 %s1915_s28, 4  ;;  %s1838_s23 = int_to_ptr.vmem [resolvable:$false] %s1837_s23 }
  0x22   : > { %s1839_s11 = scalar_lea.vmem %s1838_s23, 8192  ;;  %p1840_p11 = scmp.lt.s32.totalorder %s2049_s20, %s1838_s23 }
  0x23   : > { %p1835_p2 = pnand %p1833_p0, %p1819_p1  ;;  %p1841_p4 = scmp.lt.s32.totalorder %s1839_s11, %s1832_s27 }
  0x25   : > { %p1836_p12 = pneg %p1835_p2  ;;  %p1842_p5 = por %p1841_p4, %p1840_p11 }
  0x27   : > { %p1843_p7 = pnand %p1842_p5, %p1836_p12 }
  0x29   : > { %1846 = shalt.err (!%p1843_p7)
}
  0x2a   : > { %s1916_s30 = smov 128   ;;  %s1917_s29 = smov 8  }
  0x2b   : > { %1770 = dma.hbm_to_vmem [thread:$0]  (!%p2045_p13), %s2041_s12, 4096, %s2049_s20, %s2051_s22, %s1916_s30, %s1916_s30, %s1917_s29  }
  0x2c   : > { %p1673_p9 = scmp.ge.s32.totalorder %s1913_s16, 1  ;;  %p337_p1 = scmp.lt.s32.totalorder %s1913_s16, 3 }
  0x2e   : > { %p338_p3 = pnand %p1673_p9, %p337_p1 }
  0x30   : > { %341 = sbr.rel (%p338_p3) target bundleno = 1576 (0x628), region = 52 }
  0x37   : > { %s2082_s18 = sand.u32 1, %s1905_s14  }
  0x38   : > { %s1674_s27 = sshll.u32 %s2082_s18, 8  ;;  %s344_s28 = scalar_lea.sflag [#allocation3], %s2082_s18 }
  0x39   : > { %s2086_s23 = scalar_lea.vmem [#allocation2], %s1674_s27 }
  0x3a   : > { %1892 = dma.done.wait (%p2021_p6), %s344_s28, 4096  }
  0x3b   : > { %1894 = vsyncadd (%p2021_p6), %s344_s28, 4294963200  ;;  %vm433_vm0 = vcmask 523264   ;;  %v2093_v0 = vld [vmem:[%s2086_s23 + $0x20] sm:$0xff]  ;;  %v2099_v2 = vld [vmem:[%s2086_s23 + $0x28] sm:$0xff]  ;;  %vm1919_vm1 = vmmov 0   ;;  %vm617_vm2 = vcmask 130112  }
  0x3c   : > { %v2096_v1 = vld [vmem:[%s2086_s23] sm:$0xff]  ;;  %v446_v3 = vsel %vm433_vm0, %v2093_v0, 0.0  ;;  %v2106_v5 = vld [vmem:[%s2086_s23 + $0x8] sm:$0xff]  ;;  %v449_v6 = vsel %vm433_vm0, %v2099_v2, 0.0  ;;  %v2113_v8 = vld [vmem:[%s2086_s23 + $0x30] sm:$0xff]  ;;  %vm624_vm3 = vcmask 195712  }
  0x3d   : > { %v434_v4 = vsel %vm433_vm0, %v2096_v1, 0.0  ;;  %447 = vadd.xlane.f32.xlu1 %v446_v3  ;;  %v437_v7 = vsel %vm433_vm0, %v2106_v5, 0.0  ;;  %v2116_v9 = vld [vmem:[%s2086_s23 + $0x10] sm:$0xff]  ;;  %v452_v10 = vsel %vm433_vm0, %v2113_v8, 0.0  ;;  %v2123_v12 = vld [vmem:[%s2086_s23 + $0x48] sm:$0xff]  ;;  %v2126_v13 = vld [vmem:[%s2086_s23 + $0x40] sm:$0xff] }
  0x3e   : > { %435 = vadd.xlane.f32.xlu0 %v434_v4  ;;  %v440_v11 = vsel %vm433_vm0, %v2116_v9, 0.0  ;;  %v461_v14 = vsel %vm433_vm0, %v2123_v12, 0.0  ;;  %v458_v15 = vsel %vm433_vm0, %v2126_v13, 0.0  ;;  %v2133_v16 = vld [vmem:[%s2086_s23 + $0x38] sm:$0xff]  ;;  %v2143_v20 = vld [vmem:[%s2086_s23 + $0x60] sm:$0xff]  ;;  %v2146_v21 = vld [vmem:[%s2086_s23 + $0x50] sm:$0xff] }
  0x3f   : > { %v2136_v17 = vld [vmem:[%s2086_s23 + $0x18] sm:$0xff]  ;;  %v455_v18 = vsel %vm433_vm0, %v2133_v16, 0.0  ;;  %v470_v22 = vsel %vm433_vm0, %v2143_v20, 0.0  ;;  %v464_v23 = vsel %vm433_vm0, %v2146_v21, 0.0  ;;  %v2156_v25 = vld [vmem:[%s2086_s23 + $0x68] sm:$0xff]  ;;  %v2163_v28 = vld [vmem:[%s2086_s23 + $0x80] sm:$0xff] }
  0x40   : > { %v443_v19 = vsel %vm433_vm0, %v2136_v17, 0.0  ;;  %v2153_v24 = vld [vmem:[%s2086_s23 + $0x58] sm:$0xff]  ;;  %v473_v27 = vsel %vm433_vm0, %v2156_v25, 0.0  ;;  %v2166_v29 = vld [vmem:[%s2086_s23 + $0x70] sm:$0xff]  ;;  %v482_v30 = vsel %vm433_vm0, %v2163_v28, 0.0  ;;  %v2176_v33 = vld [vmem:[%s2086_s23 + $0x88] sm:$0xff] }
  0x41   : > { %450 = vadd.xlane.f32.xlu1 %v449_v6  ;;  %v467_v26 = vsel %vm433_vm0, %v2153_v24, 0.0  ;;  %v476_v31 = vsel %vm433_vm0, %v2166_v29, 0.0  ;;  %v2173_v32 = vld [vmem:[%s2086_s23 + $0x78] sm:$0xff]  ;;  %v485_v35 = vsel %vm433_vm0, %v2176_v33, 0.0  ;;  %v2183_v36 = vld [vmem:[%s2086_s23 + $0xa0] sm:$0xff]  ;;  %v2186_v37 = vld [vmem:[%s2086_s23 + $0x90] sm:$0xff] }
  0x42   : > { %438 = vadd.xlane.f32.xlu0 %v437_v7  ;;  %v479_v34 = vsel %vm433_vm0, %v2173_v32, 0.0  ;;  %v494_v38 = vsel %vm433_vm0, %v2183_v36, 0.0  ;;  %v488_v39 = vsel %vm433_vm0, %v2186_v37, 0.0  ;;  %v2193_v40 = vld [vmem:[%s2086_s23 + $0x98] sm:$0xff]  ;;  %v2196_v41 = vld [vmem:[%s2086_s23 + $0xa8] sm:$0xff]  ;;  %v2203_v44 = vld [vmem:[%s2086_s23 + $0xc0] sm:$0xff] }
  0x43   : > { %2585 = vst [vmem:[#allocation9_spill] sm:$0xff] %v2193_v40  ;;  %v491_v42 = vsel %vm433_vm0, %v2193_v40, 0.0  ;;  %v497_v43 = vsel %vm433_vm0, %v2196_v41, 0.0  ;;  %2586 = vst [vmem:[#allocation10_spill] sm:$0xff] %v2203_v44  ;;  %v2206_v45 = vld [vmem:[%s2086_s23 + $0xb0] sm:$0xff]  ;;  %v506_v46 = vsel %vm433_vm0, %v2203_v44, 0.0 }
  0x44   : > { %2587 = vst [vmem:[#allocation11_spill] sm:$0xff] %v2206_v45  ;;  %v500_v47 = vsel %vm433_vm0, %v2206_v45, 0.0  ;;  %v2213_v48 = vld [vmem:[%s2086_s23 + $0xb8] sm:$0xff]  ;;  %v2216_v49 = vld [vmem:[%s2086_s23 + $0xc8] sm:$0xff]  ;;  %v2223_v52 = vld [vmem:[%s2086_s23 + $0xe0] sm:$0xff]  ;;  %v2567_v7 = vmov 0.0|0.0  }
  0x45   : > { %453 = vadd.xlane.f32.xlu1 %v452_v10  ;;  %2588 = vst [vmem:[#allocation12_spill] sm:$0xff] %v2213_v48  ;;  %2589 = vst [vmem:[#allocation13_spill] sm:$0xff] %v2216_v49  ;;  %v503_v50 = vsel %vm433_vm0, %v2213_v48, 0.0  ;;  %v509_v51 = vsel %vm433_vm0, %v2216_v49, 0.0  ;;  %v2226_v53 = vld [vmem:[%s2086_s23 + $0xd0] sm:$0xff]  ;;  %v518_v54 = vsel %vm433_vm0, %v2223_v52, 0.0  ;;  %1748 = vmatprep.subr.bf16.mxu0 %v2567_v7 }
  0x46   : > { %441 = vadd.xlane.f32.xlu0 %v440_v11  ;;  %2590 = vst [vmem:[#allocation14_spill] sm:$0xff] %v2223_v52  ;;  %2591 = vst [vmem:[#allocation15_spill] sm:$0xff] %v2226_v53  ;;  %v512_v55 = vsel %vm433_vm0, %v2226_v53, 0.0  ;;  %v2233_v56 = vld [vmem:[%s2086_s23 + $0xd8] sm:$0xff]  ;;  %v2236_v57 = vld [vmem:[%s2086_s23 + $0xe8] sm:$0xff]  ;;  %1754 = vmatprep.subr.bf16.mxu1 %v2567_v7  ;;  %vm631_vm4 = vcmask 261312  }
  0x47   : > { %2592 = vst [vmem:[#allocation16_spill] sm:$0xff] %v2233_v56  ;;  %v515_v58 = vsel %vm433_vm0, %v2233_v56, 0.0  ;;  %v521_v59 = vsel %vm433_vm0, %v2236_v57, 0.0  ;;  %v2243_v60 = vld [vmem:[%s2086_s23 + $0xf0] sm:$0xff]  ;;  %v2246_v61 = vld [vmem:[%s2086_s23 + $0xf8] sm:$0xff]  ;;  %v563_v3 = vld [vmem:[%s2556_s1] sm:$0xff] }
  0x48   : > { %2593 = vst [vmem:[#allocation17_spill] sm:$0xff] %v2246_v61  ;;  %v524_v62 = vsel %vm433_vm0, %v2243_v60, 0.0  ;;  %v527_v63 = vsel %vm433_vm0, %v2246_v61, 0.0  ;;  %v564_v4 = vld [vmem:[%s2556_s1 + $0x8] sm:$0xff]  ;;  %v565_v10 = vld [vmem:[%s2556_s1 + $0x10] sm:$0xff]  ;;  %v566_v11 = vld [vmem:[%s2556_s1 + $0x18] sm:$0xff] }
  0x49   : > { %462 = vadd.xlane.f32.xlu1 %v461_v14  ;;  %v1749_v6 = vpack.c.bf16 %v564_v4, %v563_v3  ;;  %v1752_v14 = vpack.c.bf16 %v566_v11, %v565_v10  ;;  %vm766_vm5 = vcmask 1041409   ;;  %vm768_vm6 = vcmask 1042434   ;;  %p393_p6 = scmp.lt.s32.totalorder %s1999_s17, 1  ;;  %s1675_s20 = sshll.u32 %s2082_s18, 3 }
  0x4a   : > { %459 = vadd.xlane.f32.xlu0 %v458_v15  ;;  %v2568_v15 = vmov 0.0   ;;  %vm770_vm7 = vcmask 1043459   ;;  %vm772_vm8 = vcmask 1044484   ;;  %vm774_vm9 = vcmask 1045509   ;;  %s391_s11 = scalar_lea.vmem [#allocation5], %s1675_s20  ;;  %p2605_p12 = scmp.ne.s32.totalorder %s2582_s25, 0 }
  0x4b   : > { %1750 = vmatpush3.bf16.msra.mxu0 %v1749_v6  ;;  %1717 = vmatprep.mubr.msk.f32.mxu0 %vm1919_vm1, %v2568_v15  ;;  %vm776_vm10 = vcmask 1046534   ;;  %vm778_vm11 = vcmask 1047559   ;;  %vm780_vm12 = vcmask 261120   ;;  %vm855_vm13 = vcmask 130048   ;;  %s394_s22 = scalar_select %p393_p6, %s1999_s17, 1 }
  0x4c   : > { %1751 = vmatprep.subr.bf16.mxu0 %v2567_v7  ;;  %1724 = vmatprep.mubr.msk.f32.mxu1 %vm1919_vm1, %v2568_v15  ;;  %vm929_vm14 = vcmask 64512   ;;  %s1548_s30 = sshll.u32 %s391_s11, 4  ;;  %s2511_s30 = int_to_ptr.vmem [resolvable:$true] %s1548_s30 }
  0x4d   : > { %456 = vadd.xlane.f32.xlu1 %v455_v18  ;;  %v853_v18 = vld [vmem:[%s2560_s5] sm:$0xff]  ;;  %s1676_s24 = sshll.u32 %s394_s22, 3  ;;  %s1847_s23 = scalar_lea.vmem %s2511_s30, 128 }
  0x4e   : > { %444 = vadd.xlane.f32.xlu0 %v443_v19  ;;  %v854_v19 = vld [vmem:[%s2560_s5 + $0x8] sm:$0xff]  ;;  %s396_s21 = scalar_lea.vmem %s2563_s8, %s1676_s24  ;;  %s400_s28 = scalar_lea.vmem %s2564_s9, %s1676_s24 }
  0x4f   : > { %1753 = vmatpush3.bf16.msra.mxu0 %v1752_v14  ;;  %p1848_p11 = scmp.ne.s32.totalorder %s2511_s30, %s1847_s23  ;;  %s1922_s22 = smov [#allocation5]  }
  0x50   : > { %1738 = vmatprep.subr.mxu0 %v2568_v15  ;;  %s1851_s24 = sshll.u32 %s1922_s22, 4  ;;  %s1852_s24 = int_to_ptr.vmem [resolvable:$false] %s1851_s24 }
  0x51   : > { %471 = vadd.xlane.f32.xlu1 %v470_v22  ;;  %v1755_v22 = vpack.c.bf16 %v854_v19, %v853_v18  ;;  %p1849_p13 = pnand %p1848_p11, %p2605_p12  ;;  %s1853_s12 = scalar_lea.vmem %s1852_s24, 256 }
  0x52   : > { %465 = vadd.xlane.f32.xlu0 %v464_v23  ;;  %p1854_p10 = scmp.lt.s32.totalorder %s2511_s30, %s1852_s24  ;;  %p1855_p0 = scmp.lt.s32.totalorder %s1853_s12, %s1847_s23 }
  0x53   : > { %1756 = vmatpush3.bf16.msra.mxu1 %v1755_v22  ;;  %p1850_p8 = pneg %p1849_p13 }
  0x54   : > { %1757 = vmatprep.subr.bf16.mxu1 %v2567_v7  ;;  %p1856_p2 = por %p1855_p0, %p1854_p10 }
  0x55   : > { %468 = vadd.xlane.f32.xlu1 %v467_v26 }
  0x56   : > { %474 = vadd.xlane.f32.xlu0 %v473_v27  ;;  %p1857_p4 = pnand %p1856_p2, %p1850_p8 }
  0x59   : > { %483 = vadd.xlane.f32.xlu1 %v482_v30 }
  0x5a   : > { %477 = vadd.xlane.f32.xlu0 %v476_v31 }
  0x5d   : > { %480 = vadd.xlane.f32.xlu1 %v479_v34 }
  0x5e   : > { %486 = vadd.xlane.f32.xlu0 %v485_v35 }
  0x61   : > { %495 = vadd.xlane.f32.xlu1 %v494_v38 }
  0x62   : > { %489 = vadd.xlane.f32.xlu0 %v488_v39 }
  0x65   : > { %492 = vadd.xlane.f32.xlu1 %v491_v42 }
  0x66   : > { %498 = vadd.xlane.f32.xlu0 %v497_v43 }
  0x69   : > { %507 = vadd.xlane.f32.xlu1 %v506_v46 }
  0x6a   : > { %501 = vadd.xlane.f32.xlu0 %v500_v47 }
  0x6d   : > { %504 = vadd.xlane.f32.xlu1 %v503_v50 }
  0x6e   : > { %510 = vadd.xlane.f32.xlu0 %v509_v51  ;;  %v606_v51 = vlaneseq }
  0x71   : > { %519 = vadd.xlane.f32.xlu1 %v518_v54 }
  0x72   : > { %513 = vadd.xlane.f32.xlu0 %v512_v55 }
  0x75   : > { %516 = vadd.xlane.f32.xlu1 %v515_v58  ;;  %v2281_v58 = vand.u32 127, %v606_v51 }
  0x76   : > { %522 = vadd.xlane.f32.xlu0 %v521_v59  ;;  %v2283_v59 = vshrl.u32 %v606_v51, 7 }
  0x77   : > { %v612_v3 = vadd.s32 4294967288, %v2281_v58  ;;  %v619_v4 = vadd.s32 4294967280, %v2281_v58  ;;  %v626_v6 = vadd.s32 4294967272, %v2281_v58 }
  0x78   : > { %v2290_v10 = vsub.s32 %v2281_v58, %v2283_v59 }
  0x79   : > { %528 = vadd.xlane.f32.xlu1 %v527_v63  ;;  %v2295_v19 = vsub.s32 %v612_v3, %v2283_v59  ;;  %v2298_v7 = vsub.s32 %v619_v4, %v2283_v59  ;;  %v2301_v53 = vsub.s32 %v626_v6, %v2283_v59 }
  0x7a   : > { %525 = vadd.xlane.f32.xlu0 %v524_v62 }
  0xca   : > { %v448_v23 = vpop.xlane.xlu1 %447 }
  0xcb   : > { %v436_v26 = vpop.xlane.xlu0 %435  ;;  %v535_v18 = vmul.f32 0.015625, %v448_v23 }
  0xcc   : > { %v531_v48 = vmul.f32 0.015625, %v436_v26 }
  0xcd   : > { %v636_v23 = vrot.slane %v535_v18, %v2290_v10 }
  0xce   : > { %v451_v27 = vpop.xlane.xlu1 %450  ;;  %v611_v4 = vrot.slane %v531_v48, %v2290_v10 }
  0xcf   : > { %v439_v30 = vpop.xlane.xlu0 %438  ;;  %v536_v22 = vmul.f32 0.015625, %v451_v27 }
  0xd0   : > { %v532_v51 = vmul.f32 0.015625, %v439_v30 }
  0xd1   : > { %v640_v3 = vrot.slane %v536_v22, %v2295_v19 }
  0xd2   : > { %v454_v31 = vpop.xlane.xlu1 %453  ;;  %v616_v27 = vrot.slane %v532_v51, %v2295_v19 }
  0xd3   : > { %v442_v34 = vpop.xlane.xlu0 %441  ;;  %v537_v15 = vmul.f32 0.015625, %v454_v31  ;;  %v641_v22 = vsel %vm617_vm2, %v640_v3, %v636_v23 }
  0xd4   : > { %v533_v56 = vmul.f32 0.015625, %v442_v34  ;;  %v618_v51 = vsel %vm617_vm2, %v616_v27, %v611_v4 }
  0xd5   : > { %v645_v30 = vrot.slane %v537_v15, %v2298_v7 }
  0xd6   : > { %v463_v35 = vpop.xlane.xlu1 %462  ;;  %v623_v31 = vrot.slane %v533_v56, %v2298_v7 }
  0xd7   : > { %v460_v38 = vpop.xlane.xlu0 %459  ;;  %v540_v26 = vmul.f32 0.015625, %v463_v35  ;;  %v646_v56 = vsel %vm624_vm3, %v645_v30, %v641_v22 }
  0xd8   : > { %v539_v34 = vmul.f32 0.015625, %v460_v38  ;;  %v625_v35 = vsel %vm624_vm3, %v623_v31, %v618_v51 }
  0xd9   : > { %v659_v48 = vrot.slane %v540_v26, %v2295_v19 }
  0xda   : > { %v457_v39 = vpop.xlane.xlu1 %456 }
  0xdb   : > { %v445_v42 = vpop.xlane.xlu0 %444  ;;  %v538_v44 = vmul.f32 0.015625, %v457_v39 }
  0xdc   : > { %v534_v40 = vmul.f32 0.015625, %v445_v42 }
  0xdd   : > { %v650_v39 = vrot.slane %v538_v44, %v2301_v53  ;;  %v655_v44 = vrot.slane %v539_v34, %v2290_v10 }
  0xde   : > { %v472_v43 = vpop.xlane.xlu1 %471  ;;  %v630_v42 = vrot.slane %v534_v40, %v2301_v53 }
  0xdf   : > { %v466_v46 = vpop.xlane.xlu0 %465  ;;  %v651_v40 = vsel %vm631_vm4, %v650_v39, %v646_v56  ;;  %v543_v4 = vmul.f32 0.015625, %v472_v43  ;;  %v660_v30 = vsel %vm617_vm2, %v659_v48, %v655_v44 }
  0xe0   : > { %v541_v6 = vmul.f32 0.015625, %v466_v46  ;;  %v632_v38 = vsel %vm631_vm4, %v630_v42, %v625_v35 }
  0xe1   : > { %v767_v31 = vsel %vm766_vm5, %v651_v40, %v632_v38  ;;  %v674_v56 = vrot.slane %v543_v4, %v2290_v10 }
  0xe2   : > { %v469_v47 = vpop.xlane.xlu1 %468  ;;  %v664_v46 = vrot.slane %v541_v6, %v2298_v7 }
  0xe3   : > { %v475_v50 = vpop.xlane.xlu0 %474  ;;  %v542_v15 = vmul.f32 0.015625, %v469_v47 }
  0xe4   : > { %v544_v52 = vmul.f32 0.015625, %v475_v50  ;;  %v665_v34 = vsel %vm624_vm3, %v664_v46, %v660_v30 }
  0xe5   : > { %v669_v47 = vrot.slane %v542_v15, %v2301_v53 }
  0xe6   : > { %v484_v54 = vpop.xlane.xlu1 %483  ;;  %v678_v39 = vrot.slane %v544_v52, %v2295_v19 }
  0xe7   : > { %v2279_v55 = vpop.xlane.xlu0 %477  ;;  %v547_v26 = vmul.f32 0.015625, %v484_v54  ;;  %v670_v54 = vsel %vm631_vm4, %v669_v47, %v665_v34 }
  0xe8   : > { %v545_v42 = vmul.f32 0.015625, %v2279_v55 }
  0xe9   : > { %v693_v52 = vrot.slane %v547_v26, %v2290_v10 }
  0xea   : > { %v481_v62 = vpop.xlane.xlu1 %480 }
  0xeb   : > { %v487_v63 = vpop.xlane.xlu0 %486  ;;  %v546_v50 = vmul.f32 0.015625, %v481_v62  ;;  %v679_v62 = vsel %vm617_vm2, %v678_v39, %v674_v56 }
  0xec   : > { %v548_v23 = vmul.f32 0.015625, %v487_v63 }
  0xed   : > { %v688_v38 = vrot.slane %v546_v50, %v2301_v53 }
  0xee   : > { %v2292_v11 = vpop.xlane.xlu1 %495  ;;  %v697_v63 = vrot.slane %v548_v23, %v2295_v19 }
  0xef   : > { %v490_v14 = vpop.xlane.xlu0 %489  ;;  %v551_v55 = vmul.f32 0.015625, %v2292_v11 }
  0xf0   : > { %v549_v6 = vmul.f32 0.015625, %v490_v14 }
  0xf1   : > { %v712_v26 = vrot.slane %v551_v55, %v2290_v10 }
  0xf2   : > { %v493_v61 = vpop.xlane.xlu1 %492 }
  0xf3   : > { %v499_v49 = vpop.xlane.xlu0 %498  ;;  %v550_v43 = vmul.f32 0.015625, %v493_v61  ;;  %v702_v61 = vrot.slane %v549_v6, %v2298_v7 }
  0xf4   : > { %v552_v22 = vmul.f32 0.015625, %v499_v49  ;;  %v683_v49 = vrot.slane %v545_v42, %v2298_v7 }
  0xf5   : > { %v707_v46 = vrot.slane %v550_v43, %v2301_v53 }
  0xf6   : > { %v508_v18 = vpop.xlane.xlu1 %507  ;;  %v716_v23 = vrot.slane %v552_v22, %v2295_v19  ;;  %v684_v42 = vsel %vm624_vm3, %v683_v49, %v679_v62 }
  0xf7   : > { %v502_v45 = vpop.xlane.xlu0 %501  ;;  %v555_v40 = vmul.f32 0.015625, %v508_v18  ;;  %v689_v43 = vsel %vm631_vm4, %v688_v38, %v684_v42 }
  0xf8   : > { %v553_v35 = vmul.f32 0.015625, %v502_v45  ;;  %v698_v45 = vsel %vm617_vm2, %v697_v63, %v693_v52 }
  0xf9   : > { %v703_v6 = vsel %vm624_vm3, %v702_v61, %v698_v45  ;;  %v731_v50 = vrot.slane %v555_v40, %v2290_v10 }
  0xfa   : > { %v505_v3 = vpop.xlane.xlu1 %504  ;;  %v708_v22 = vsel %vm631_vm4, %v707_v46, %v703_v6  ;;  %v2595_v6 = vmov 0.0|0.0  }
  0xfb   : > { %v511_v27 = vpop.xlane.xlu0 %510  ;;  %v554_v14 = vmul.f32 0.015625, %v505_v3 }
  0xfc   : > { %v556_v48 = vmul.f32 0.015625, %v511_v27  ;;  %v721_v27 = vrot.slane %v553_v35, %v2298_v7 }
  0xfd   : > { %v726_v18 = vrot.slane %v554_v14, %v2301_v53 }
  0xfe   : > { %v520_v51 = vpop.xlane.xlu1 %519  ;;  %v735_v4 = vrot.slane %v556_v48, %v2295_v19 }
  0xff   : > { %v514_v15 = vpop.xlane.xlu0 %513  ;;  %v559_v34 = vmul.f32 0.015625, %v520_v51 }
 0x100   : > { %v557_v44 = vmul.f32 0.015625, %v514_v15  ;;  %v717_v15 = vsel %vm617_vm2, %v716_v23, %v712_v26  ;;  %v736_v52 = vsel %vm617_vm2, %v735_v4, %v731_v50  ;;  %v1678_v4 = vld [vmem:[%s2557_s2] ss:$0 sm:$0xff] }
 0x101   : > { %v722_v48 = vsel %vm624_vm3, %v721_v27, %v717_v15  ;;  %v750_v49 = vrot.slane %v559_v34, %v2290_v10  ;;  %v932_v27 = vld [vmem:[%s2558_s3 + $0x8] sm:$0xff]  ;;  %v933_v34 = vld [vmem:[%s2558_s3 + $0x10] sm:$0xff] }
 0x102   : > { %v517_v11 = vpop.xlane.xlu1 %516  ;;  %v740_v39 = vrot.slane %v557_v44, %v2298_v7  ;;  %v769_v44 = vsel %vm768_vm6, %v670_v54, %v767_v31  ;;  %v727_v62 = vsel %vm631_vm4, %v726_v18, %v722_v48 }
 0x103   : > { %v523_v3 = vpop.xlane.xlu0 %522  ;;  %v558_v47 = vmul.f32 0.015625, %v517_v11  ;;  %v771_v40 = vsel %vm770_vm7, %v689_v43, %v769_v44 }
 0x104   : > { %v560_v30 = vmul.f32 0.015625, %v523_v3  ;;  %v741_v61 = vsel %vm624_vm3, %v740_v39, %v736_v52  ;;  %v773_v46 = vsel %vm772_vm8, %v708_v22, %v771_v40  ;;  %v934_v39 = vld [vmem:[%s2558_s3 + $0x18] sm:$0xff]  ;;  %v1681_v22 = vld [vmem:[%s2559_s4] ss:$0 sm:$0xff] }
 0x105   : > { %v745_v63 = vrot.slane %v558_v47, %v2301_v53  ;;  %v775_v54 = vsel %vm774_vm9, %v727_v62, %v773_v46  ;;  %v1761_v42 = vpack.c.bf16 %v934_v39, %v933_v34  ;;  %v1036_v40 = vld [vmem:[%s2561_s6] sm:$0xff]  ;;  %v1259_v39 = vsub.s32 4, %v2283_v59 }
 0x106   : > { %v754_v56 = vrot.slane %v560_v30, %v2295_v19  ;;  %v529_v51 = vpop.xlane.xlu1 %528 }
 0x107   : > { %v526_v35 = vpop.xlane.xlu0 %525  ;;  %v562_v14 = vmul.f32 0.015625, %v529_v51  ;;  %v746_v19 = vsel %vm631_vm4, %v745_v63, %v741_v61 }
 0x108   : > { %v561_v55 = vmul.f32 0.015625, %v526_v35  ;;  %v755_v23 = vsel %vm617_vm2, %v754_v56, %v750_v49  ;;  %v777_v11 = vsel %vm776_vm10, %v746_v19, %v775_v54 }
 0x109   : > { %v764_v45 = vrot.slane %v562_v14, %v2301_v53  ;;  %v931_v53 = vld [vmem:[%s2558_s3] sm:$0xff] }
 0x10a   : > { %v759_v38 = vrot.slane %v561_v55, %v2298_v7  ;;  %v2594_v7 = vmov 0.0   ;;  %v1758_v30 = vpack.c.bf16 %v932_v27, %v931_v53  ;;  %v1221_v27 = vsub.s32 2, %v2283_v59 }
 0x10c   : > { %v760_v31 = vsel %vm624_vm3, %v759_v38, %v755_v23 }
 0x10d   : > { %v765_v10 = vsel %vm631_vm4, %v764_v45, %v760_v31  ;;  %v1110_v31 = vld [vmem:[%s2562_s7] sm:$0xff] }
 0x10e   : > { %v779_v3 = vsel %vm778_vm11, %v765_v10, %v777_v11  ;;  %v1921_v10 = vmov 0   ;;  %v1202_v11 = vsub.s32 1, %v2283_v59 }
 0x10f   : > { %1718 = vmatmul.mubr.msk.f32.vlgmr.msra.gmra.mrb[0].mxu0 %vm780_vm12, %v779_v3  ;;  %1815 = vset.pattern.permute.xlu1 %v1921_v10 }
 0x110   : > { %1740 = vmatprep.mubr.msk.f32.mxu0 %vm1919_vm1, %v2594_v7  ;;  %1739 = vmatpush3.msra.mxu0 %v1036_v40 }
 0x111   : > { %1743 = vmatprep.subr.mxu0 %v2594_v7  ;;  %1816 = vset.pattern.permute.xlu0 %v1921_v10 }
 0x1e2   : > { %v849_v47 = vpop.f32.mrb[0].mxu0 }
 0x1e3   : > { %v850_v26 = vadd.f32 %v1678_v4, %v849_v47  ;;  %v1719_v18 = vpop.f32.mrb[1].mxu0  ;;  %v1183_v4 = vsub.s32 0, %v2283_v59 }
 0x1e4   : > { %v1240_v18 = vsub.s32 3, %v2283_v59 }
 0x1e5   : > { %1725 = vmatmul.mubr.msk.f32.vlgmr.msra.gmra.mrb[0].mxu1 %vm855_vm13, %v850_v26 }
 0x1e6   : > { %1759 = vmatpush3.bf16.msra.mxu1 %v1758_v30  ;;  %1735 = vmatprep.mubr.msk.f32.mxu1 %vm1919_vm1, %v2594_v7 }
 0x1e7   : > { %1760 = vmatprep.subr.bf16.mxu1 %v2595_v6  ;;  %v1278_v6 = vsub.s32 5, %v2283_v59 }
 0x1ea   : > { %1762 = vmatpush3.bf16.msra.mxu1 %v1761_v42 }
 0x1ed   : > { %1736 = vmatmul.mubr.msk.f32.vlgmr.msra.gmra.mrb[2].mxu1 %vm780_vm12, %v779_v3 }
 0x2b8   : > { %v925_v50 = vpop.f32.mrb[0].mxu1 }
 0x2b9   : > { %930 = vst.msk [vmem:[%s396_s21] sm:$0xff] %vm929_vm14, %v925_v50  ;;  %v1726_v63 = vpop.f32.mrb[1].mxu1  ;;  %v1013_v43 = vsel %vm929_vm14, %v925_v50, -inf  ;;  %s1687_s21 = sshll.u32 %s1999_s17, 7  ;;  %s1529_s17 = scalar_lea.sflag [#allocation4], %s2082_s18 }
 0x2ba   : > { %1014 = vmax.xlane.f32.xlu0 %v1013_v43  ;;  %v1297_v63 = vsub.s32 6, %v2283_v59 }
 0x2c0   : > { %v1008_v15 = vpop.f32.mrb[2].mxu1 }
 0x2c1   : > { %v1009_v56 = vadd.f32 %v1681_v22, %v1008_v15  ;;  %v1737_v35 = vpop.f32.mrb[3].mxu1  ;;  %v1316_v22 = vsub.s32 7, %v2283_v59 }
 0x2c3   : > { %1012 = vst.msk [vmem:[%s400_s28] sm:$0xff] %vm929_vm14, %v1009_v56  ;;  %s2509_s28 = scalar_lea.hbm %s2565_s10, %s1687_s21 }
 0x347   : > { %v1015_v51 = vpop.xlane.xlu0 %1014 }
 0x348   : > { %vm1016_vm15 = vcmp.eq.f32.partialorder %v925_v50, %v1015_v51 }
 0x349   : > { %v1017_v48 = vsel %vm1016_vm15, %v2281_v58, 8 }
 0x34a   : > { %v1018_v52 = vsel %vm929_vm14, %v1017_v48, 2147483647 }
 0x34b   : > { %v1020_v55 = vshra.s32 %v1018_v52, 16  ;;  %v1019_v44 = vand.u32 65535, %v1018_v52 }
 0x34d   : > { %v1022_v14 = vcvt.s32.f32 %v1020_v55  ;;  %v1021_v49 = vcvt.s32.f32 %v1019_v44 }
 0x34f   : > { %1023 = vmin.xlane.f32.xlu1 %v1022_v14 }
 0x3dc   : > { %v1024_v62 = vpop.xlane.xlu1 %1023 }
 0x3dd   : > { %vm1025_vm2 = vcmp.eq.f32.partialorder %v1022_v14, %v1024_v62  ;;  %v1030_v19 = vcvt.f32.s32 %v1024_v62 }
 0x3de   : > { %v1026_v61 = vsel %vm1025_vm2, %v1021_v49, inf }
 0x3df   : > { %1027 = vmin.xlane.f32.xlu0 %v1026_v61  ;;  %v1031_v45 = vshll.u32 %v1030_v19, 16 }
 0x46c   : > { %v1028_v38 = vpop.xlane.xlu0 %1027 }
 0x46d   : > { %v1029_v46 = vcvt.f32.s32 %v1028_v38 }
 0x46f   : > { %v1032_v23 = vadd.s32 %v1031_v45, %v1029_v46 }
 0x471   : > { %vm1033_vm3 = vcmp.eq.s32.totalorder %v2281_v58, %v1032_v23 }
 0x472   : > { %v1683_v54 = vsel %vm1033_vm3, 1.0, %v2594_v7 }
 0x473   : > { %1741 = vmatmul.mubr.msk.f32.vlgmr.msra.gmra.mrb[2].mxu0 %vm929_vm14, %v1683_v54 }
 0x474   : > { %1744 = vmatpush3.msra.mxu0 %v1110_v31  ;;  %1745 = vmatprep.mubr.msk.f32.mxu0 %vm1919_vm1, %v2594_v7 }
 0x477   : > { %1746 = vmatmul.mubr.msk.f32.vlgmr.msra.gmra.mrb[4].mxu0 %vm929_vm14, %v1683_v54 }
 0x546   : > { %v1106_v58 = vpop.f32.mrb[2].mxu0 }
 0x547   : > { %v1742_v3 = vpop.f32.mrb[3].mxu0  ;;  %v1203_v53 = vrot.slane %v1106_v58, %v1202_v11  ;;  %v1222_v26 = vrot.slane %v1106_v58, %v1221_v27  ;;  %v1184_v7 = vrot.slane %v1106_v58, %v1183_v4  ;;  %v1241_v34 = vrot.slane %v1106_v58, %v1240_v18 }
 0x548   : > { %v1260_v42 = vrot.slane %v1106_v58, %v1259_v39  ;;  %v1279_v50 = vrot.slane %v1106_v58, %v1278_v6  ;;  %v1298_v43 = vrot.slane %v1106_v58, %v1297_v63  ;;  %v1317_v15 = vrot.slane %v1106_v58, %v1316_v22 }
 0x549   : > { %1209 = vbcast.lane.b32.xlu0 %v1203_v53, 264  ;;  %1205 = vbcast.lane.b32.xlu1 %v1203_v53, 256 }
 0x54a   : > { %v1177_v47 = vpop.f32.mrb[4].mxu0 }
 0x54b   : > { %v1747_v30 = vpop.f32.mrb[5].mxu0 }
 0x54d   : > { %1224 = vbcast.lane.b32.xlu1 %v1222_v26, 256  ;;  %1190 = vbcast.lane.b32.xlu0 %v1184_v7, 264 }
 0x551   : > { %1228 = vbcast.lane.b32.xlu1 %v1222_v26, 264  ;;  %1243 = vbcast.lane.b32.xlu0 %v1241_v34, 256 }
 0x555   : > { %1232 = vbcast.lane.b32.xlu0 %v1222_v26, 272  ;;  %1186 = vbcast.lane.b32.xlu1 %v1184_v7, 256 }
 0x559   : > { %1266 = vbcast.lane.b32.xlu0 %v1260_v42, 264  ;;  %1213 = vbcast.lane.b32.xlu1 %v1203_v53, 272 }
 0x55d   : > { %1217 = vbcast.lane.b32.xlu0 %v1203_v53, 280  ;;  %1247 = vbcast.lane.b32.xlu1 %v1241_v34, 264 }
 0x561   : > { %1281 = vbcast.lane.b32.xlu0 %v1279_v50, 256  ;;  %1262 = vbcast.lane.b32.xlu1 %v1260_v42, 256 }
 0x565   : > { %1236 = vbcast.lane.b32.xlu0 %v1222_v26, 280  ;;  %1194 = vbcast.lane.b32.xlu1 %v1184_v7, 272 }
 0x569   : > { %1300 = vbcast.lane.b32.xlu0 %v1298_v43, 256  ;;  %1251 = vbcast.lane.b32.xlu1 %v1241_v34, 272 }
 0x56d   : > { %1198 = vbcast.lane.b32.xlu0 %v1184_v7, 280  ;;  %1285 = vbcast.lane.b32.xlu1 %v1279_v50, 264 }
 0x571   : > { %1289 = vbcast.lane.b32.xlu0 %v1279_v50, 272  ;;  %1270 = vbcast.lane.b32.xlu1 %v1260_v42, 272 }
 0x575   : > { %1323 = vbcast.lane.b32.xlu0 %v1317_v15, 264  ;;  %1304 = vbcast.lane.b32.xlu1 %v1298_v43, 264 }
 0x579   : > { %1308 = vbcast.lane.b32.xlu0 %v1298_v43, 272  ;;  %1255 = vbcast.lane.b32.xlu1 %v1241_v34, 280 }
 0x57d   : > { %1327 = vbcast.lane.b32.xlu0 %v1317_v15, 272  ;;  %1319 = vbcast.lane.b32.xlu1 %v1317_v15, 256 }
 0x581   : > { %1331 = vbcast.lane.b32.xlu0 %v1317_v15, 280  ;;  %1274 = vbcast.lane.b32.xlu1 %v1260_v42, 280 }
 0x585   : > { %1293 = vbcast.lane.b32.xlu1 %v1279_v50, 280 }
 0x589   : > { %1312 = vbcast.lane.b32.xlu1 %v1298_v43, 280 }
 0x58d   : > { %1471 = vperm.xlu1 %1815, %v1177_v47  }
 0x5bb   : > { %v1210_v56 = vpop.permute.xlu0 %1209  ;;  %v1206_v35 = vpop.permute.xlu1 %1205 }
 0x5bc   : > { %v1338_v31 = vmul.f32 %v1210_v56, %v2099_v2  ;;  %v1337_v54 = vmul.f32 %v1206_v35, %v2093_v0 }
 0x5be   : > { %v1379_v3 = vsel %vm433_vm0, %v1338_v31, 0.0  ;;  %v1378_v53 = vsel %vm433_vm0, %v1337_v54, 0.0 }
 0x5bf   : > { %v1225_v51 = vpop.permute.xlu1 %1224  ;;  %v1191_v48 = vpop.permute.xlu0 %1190  ;;  %v1380_v7 = vadd.f32 %v1379_v3, %v1378_v53 }
 0x5c0   : > { %v1341_v27 = vmul.f32 %v1225_v51, %v2126_v13  ;;  %v1334_v34 = vmul.f32 %v1191_v48, %v2106_v5 }
 0x5c2   : > { %v1366_v56 = vsel %vm433_vm0, %v1334_v34, 0.0  ;;  %v2599_v34 = vld [vmem:[#allocation17_spill] sm:$0xff] }
 0x5c3   : > { %v1229_v52 = vpop.permute.xlu1 %1228  ;;  %v1244_v59 = vpop.permute.xlu0 %1243 }
 0x5c4   : > { %v1342_v4 = vmul.f32 %v1229_v52, %v2123_v12  ;;  %v1345_v13 = vmul.f32 %v1244_v59, %v2143_v20 }
 0x5c6   : > { %v1392_v39 = vsel %vm433_vm0, %v1342_v4, 0.0  ;;  %v1404_v35 = vsel %vm433_vm0, %v1345_v13, 0.0 }
 0x5c7   : > { %v1233_v55 = vpop.permute.xlu0 %1232  ;;  %v1187_v14 = vpop.permute.xlu1 %1186 }
 0x5c8   : > { %v1343_v26 = vmul.f32 %v1233_v55, %v2146_v21  ;;  %v1333_v2 = vmul.f32 %v1187_v14, %v2096_v1 }
 0x5ca   : > { %v1394_v6 = vsel %vm433_vm0, %v1343_v26, 0.0  ;;  %v1365_v21 = vsel %vm433_vm0, %v1333_v2, 0.0  ;;  %v2598_v26 = vld [vmem:[#allocation13_spill] sm:$0xff] }
 0x5cb   : > { %v1267_v44 = vpop.permute.xlu0 %1266  ;;  %v1214_v62 = vpop.permute.xlu1 %1213 }
 0x5cc   : > { %v1339_v58 = vmul.f32 %v1214_v62, %v2113_v8  ;;  %v1391_v8 = vsel %vm433_vm0, %v1341_v27, 0.0  ;;  %v1350_v50 = vmul.f32 %v1267_v44, %v2176_v33  ;;  %v1367_v33 = vadd.f32 %v1366_v56, %v1365_v21  ;;  %v2597_v27 = vld [vmem:[#allocation11_spill] sm:$0xff] }
 0x5cd   : > { %v1393_v22 = vadd.f32 %v1392_v39, %v1391_v8 }
 0x5ce   : > { %v1381_v18 = vsel %vm433_vm0, %v1339_v58, 0.0 }
 0x5cf   : > { %v1218_v49 = vpop.permute.xlu0 %1217  ;;  %v1248_v61 = vpop.permute.xlu1 %1247  ;;  %v1382_v63 = vadd.f32 %v1381_v18, %v1380_v7  ;;  %v1395_v52 = vadd.f32 %v1394_v6, %v1393_v22  ;;  %v2601_v6 = vld [vmem:[#allocation10_spill] sm:$0xff] }
 0x5d0   : > { %v1340_v0 = vmul.f32 %v1218_v49, %v2133_v16  ;;  %v1346_v16 = vmul.f32 %v1248_v61, %v2156_v25 }
 0x5d2   : > { %v1383_v1 = vsel %vm433_vm0, %v1340_v0, 0.0  ;;  %v1405_v59 = vsel %vm433_vm0, %v1346_v16, 0.0 }
 0x5d3   : > { %v1282_v40 = vpop.permute.xlu0 %1281  ;;  %v1263_v19 = vpop.permute.xlu1 %1262  ;;  %v2455_v51 = vadd.f32 %v1383_v1, %v1382_v63 }
 0x5d4   : > { %v1349_v43 = vmul.f32 %v1263_v19, %v2163_v28  ;;  %v1406_v19 = vadd.f32 %v1405_v59, %v1404_v35 }
 0x5d5   : > { %v1385_v61 = vrot.slane %v2455_v51, 4 }
 0x5d7   : > { %v1237_v38 = vpop.permute.xlu0 %1236  ;;  %v1195_v45 = vpop.permute.xlu1 %1194 }
 0x5d8   : > { %v1344_v5 = vmul.f32 %v1237_v38, %v2153_v24  ;;  %v1335_v20 = vmul.f32 %v1195_v45, %v2116_v9  ;;  %v1418_v24 = vsel %vm433_vm0, %v1350_v50, 0.0  ;;  %v1417_v9 = vsel %vm433_vm0, %v1349_v43, 0.0 }
 0x5d9   : > { %v1419_v31 = vadd.f32 %v1418_v24, %v1417_v9 }
 0x5da   : > { %v1368_v14 = vsel %vm433_vm0, %v1335_v20, 0.0 }
 0x5db   : > { %v2427_v46 = vpop.permute.xlu0 %1300  ;;  %v1252_v23 = vpop.permute.xlu1 %1251 }
 0x5dc   : > { %v1347_v15 = vmul.f32 %v1252_v23, %v2166_v29  ;;  %v1396_v29 = vsel %vm433_vm0, %v1344_v5, 0.0  ;;  %v1357_v21 = vmul.f32 %v2427_v46, %v2601_v6  ;;  %v2603_v46 = vld [vmem:[#allocation12_spill] sm:$0xff] }
 0x5dd   : > { %v1397_v3 = vadd.f32 %v1396_v29, %v1395_v52 }
 0x5de   : > { %v1407_v44 = vsel %vm433_vm0, %v1347_v15, 0.0  ;;  %v1443_v24 = vsel %vm433_vm0, %v1357_v21, 0.0 }
 0x5df   : > { %v1199_v10 = vpop.permute.xlu0 %1198  ;;  %v1286_v11 = vpop.permute.xlu1 %1285  ;;  %v1408_v53 = vadd.f32 %v1407_v44, %v1406_v19  ;;  %v1398_v22 = vrot.slane %v1397_v3, 4 }
 0x5e0   : > { %v1336_v28 = vmul.f32 %v1199_v10, %v2136_v17  ;;  %v1353_v17 = vmul.f32 %v1282_v40, %v2183_v36  ;;  %v1354_v38 = vmul.f32 %v1286_v11, %v2196_v41  ;;  %v2596_v10 = vld [vmem:[#allocation14_spill] sm:$0xff] }
 0x5e3   : > { %v1290_v47 = vpop.permute.xlu0 %1289  ;;  %v1271_v30 = vpop.permute.xlu1 %1270 }
 0x5e4   : > { %v1351_v62 = vmul.f32 %v1271_v30, %v2186_v37  ;;  %v1369_v37 = vadd.f32 %v1368_v14, %v1367_v33  ;;  %v1355_v4 = vmul.f32 %v1290_v47, %v2597_v27  ;;  %v1431_v30 = vsel %vm433_vm0, %v1354_v38, 0.0  ;;  %v2600_v47 = vld [vmem:[#allocation9_spill] sm:$0xff] }
 0x5e5   : > { %v1399_v14 = vadd.f32 %v1398_v22, %v1397_v3 }
 0x5e6   : > { %v1420_v36 = vsel %vm433_vm0, %v1351_v62, 0.0  ;;  %v1433_v50 = vsel %vm433_vm0, %v1355_v4, 0.0 }
 0x5e7   : > { %v1324_v12 = vpop.permute.xlu0 %1323  ;;  %v1305_v42 = vpop.permute.xlu1 %1304  ;;  %v1421_v1 = vadd.f32 %v1420_v36, %v1419_v31 }
 0x5e8   : > { %v1362_v49 = vmul.f32 %v1324_v12, %v2236_v57  ;;  %v1430_v12 = vsel %vm433_vm0, %v1353_v17, 0.0 }
 0x5e9   : > { %v1432_v15 = vadd.f32 %v1431_v30, %v1430_v12 }
 0x5ea   : > { %v1457_v41 = vsel %vm433_vm0, %v1362_v49, 0.0 }
 0x5eb   : > { %v1309_v48 = vpop.permute.xlu0 %1308  ;;  %v1256_v25 = vpop.permute.xlu1 %1255 }
 0x5ec   : > { %v1348_v55 = vmul.f32 %v1256_v25, %v2173_v32  ;;  %v1370_v32 = vsel %vm433_vm0, %v1336_v28, 0.0  ;;  %v1434_v28 = vadd.f32 %v1433_v50, %v1432_v15 }
 0x5ed   : > { %v1371_v11 = vadd.f32 %v1370_v32, %v1369_v37  ;;  %v1400_v37 = vrot.slane %v1399_v14, 2 }
 0x5ee   : > { %v1409_v57 = vsel %vm433_vm0, %v1348_v55, 0.0  ;;  %v1386_v55 = vadd.f32 %v1385_v61, %v2455_v51 }
 0x5ef   : > { %v1328_v45 = vpop.permute.xlu0 %1327  ;;  %v1320_v23 = vpop.permute.xlu1 %1319  ;;  %v1410_v18 = vadd.f32 %v1409_v57, %v1408_v53  ;;  %v1372_v20 = vrot.slane %v1371_v11, 4 }
 0x5f0   : > { %v1363_v54 = vmul.f32 %v1328_v45, %v2243_v60  ;;  %v1361_v58 = vmul.f32 %v1320_v23, %v2596_v10  ;;  %v1358_v60 = vmul.f32 %v1305_v42, %v2598_v26  ;;  %v2602_v42 = vld [vmem:[#allocation15_spill] sm:$0xff]  ;;  %v2604_v45 = vld [vmem:[#allocation16_spill] sm:$0xff] }
 0x5f1   : > { %v1359_v63 = vmul.f32 %v1309_v48, %v2602_v42  ;;  %v1411_v52 = vrot.slane %v1410_v18, 4  ;;  %v1373_v19 = vadd.f32 %v1372_v20, %v1371_v11 }
 0x5f2   : > { %v1456_v40 = vsel %vm433_vm0, %v1361_v58, 0.0  ;;  %v1459_v8 = vsel %vm433_vm0, %v1363_v54, 0.0  ;;  %v1444_v25 = vsel %vm433_vm0, %v1358_v60, 0.0  ;;  %v1387_v58 = vrot.slane %v1386_v55, 2 }
 0x5f3   : > { %v1458_v2 = vadd.f32 %v1457_v41, %v1456_v40  ;;  %v1332_v0 = vpop.permute.xlu0 %1331  ;;  %v1275_v7 = vpop.permute.xlu1 %1274  ;;  %v1446_v48 = vsel %vm433_vm0, %v1359_v63, 0.0  ;;  %v1445_v44 = vadd.f32 %v1444_v25, %v1443_v24  ;;  %v1412_v17 = vadd.f32 %v1411_v52, %v1410_v18 }
 0x5f4   : > { %v1364_v39 = vmul.f32 %v1332_v0, %v2599_v34  ;;  %v1352_v13 = vmul.f32 %v1275_v7, %v2600_v47  ;;  %v1374_v27 = vrot.slane %v1373_v19, 2  ;;  %v1388_v41 = vadd.f32 %v1387_v58, %v1386_v55 }
 0x5f5   : > { %v1460_v16 = vadd.f32 %v1459_v8, %v1458_v2  ;;  %v1447_v31 = vadd.f32 %v1446_v48, %v1445_v44  ;;  %v1413_v51 = vrot.slane %v1412_v17, 2  ;;  %v1401_v40 = vadd.f32 %v1400_v37, %v1399_v14 }
 0x5f6   : > { %v1461_v43 = vsel %vm433_vm0, %v1364_v39, 0.0  ;;  %v1422_v5 = vsel %vm433_vm0, %v1352_v13, 0.0  ;;  %v1375_v30 = vadd.f32 %v1374_v27, %v1373_v19  ;;  %v1389_v18 = vrot.slane %v1388_v41, 1 }
 0x5f7   : > { %v1423_v56 = vadd.f32 %v1422_v5, %v1421_v1  ;;  %v1294_v35 = vpop.permute.xlu1 %1293  ;;  %v1462_v33 = vadd.f32 %v1461_v43, %v1460_v16  ;;  %v1414_v26 = vadd.f32 %v1413_v51, %v1412_v17  ;;  %v1402_v8 = vrot.slane %v1401_v40, 1 }
 0x5f8   : > { %v1356_v59 = vmul.f32 %v1294_v35, %v2603_v46  ;;  %v1376_v34 = vrot.slane %v1375_v30, 1  ;;  %v1390_v21 = vadd.f32 %v1389_v18, %v1388_v41 }
 0x5f9   : > { %v1424_v9 = vrot.slane %v1423_v56, 4  ;;  %v1463_v38 = vrot.slane %v1462_v33, 4  ;;  %v1415_v39 = vrot.slane %v1414_v26, 1  ;;  %v1403_v1 = vadd.f32 %v1402_v8, %v1401_v40 }
 0x5fa   : > { %v1435_v29 = vsel %vm433_vm0, %v1356_v59, 0.0  ;;  %v1377_v16 = vadd.f32 %v1376_v34, %v1375_v30 }
 0x5fb   : > { %v1436_v62 = vadd.f32 %v1435_v29, %v1434_v28  ;;  %v1313_v49 = vpop.permute.xlu1 %1312  ;;  %v1425_v54 = vadd.f32 %v1424_v9, %v1423_v56  ;;  %v1464_v61 = vadd.f32 %v1463_v38, %v1462_v33  ;;  %v1416_v50 = vadd.f32 %v1415_v39, %v1414_v26 }
 0x5fc   : > { %v1360_v23 = vmul.f32 %v1313_v49, %v2604_v45 }
 0x5fd   : > { %v1437_v32 = vrot.slane %v1436_v62, 4  ;;  %v1426_v4 = vrot.slane %v1425_v54, 2  ;;  %v1465_v60 = vrot.slane %v1464_v61, 2 }
 0x5fe   : > { %v1448_v10 = vsel %vm433_vm0, %v1360_v23, 0.0 }
 0x5ff   : > { %v1438_v53 = vadd.f32 %v1437_v32, %v1436_v62  ;;  %v1449_v57 = vadd.f32 %v1448_v10, %v1447_v31  ;;  %v1427_v0 = vadd.f32 %v1426_v4, %v1425_v54  ;;  %v1466_v47 = vadd.f32 %v1465_v60, %v1464_v61 }
 0x601   : > { %v1450_v3 = vrot.slane %v1449_v57, 4  ;;  %v1439_v36 = vrot.slane %v1438_v53, 2  ;;  %v1428_v12 = vrot.slane %v1427_v0, 1  ;;  %v1467_v42 = vrot.slane %v1466_v47, 1 }
 0x603   : > { %v1451_v11 = vadd.f32 %v1450_v3, %v1449_v57  ;;  %v1440_v7 = vadd.f32 %v1439_v36, %v1438_v53  ;;  %v1429_v56 = vadd.f32 %v1428_v12, %v1427_v0  ;;  %v1468_v24 = vadd.f32 %v1467_v42, %v1466_v47 }
 0x605   : > { %v1452_v2 = vrot.slane %v1451_v11, 2  ;;  %v1441_v6 = vrot.slane %v1440_v7, 1 }
 0x607   : > { %v1453_v13 = vadd.f32 %v1452_v2, %v1451_v11  ;;  %v1442_v35 = vadd.f32 %v1441_v6, %v1440_v7 }
 0x609   : > { %v1454_v63 = vrot.slane %v1453_v13, 1 }
 0x60b   : > { %v1455_v48 = vadd.f32 %v1454_v63, %v1453_v13 }
 0x60c   : > { %v1472_v43 = vpop.permute.xlu1 %1471 }
 0x60d   : > { %v1473_v5 = vrot.slane %v1472_v43, 1  ;;  %v1474_v22 = vrot.slane %v1472_v43, 2  ;;  %v1475_v20 = vrot.slane %v1472_v43, 3  ;;  %v1476_v15 = vrot.slane %v1472_v43, 4 }
 0x60e   : > { %v1477_v25 = vrot.slane %v1472_v43, 5  ;;  %v1478_v52 = vrot.slane %v1472_v43, 6  ;;  %v1479_v33 = vrot.slane %v1472_v43, 7  ;;  %v1488_v29 = vadd.f32 %v1472_v43, %v1377_v16 }
 0x60f   : > { %v1489_v46 = vadd.f32 %v1473_v5, %v1390_v21  ;;  %v1490_v59 = vadd.f32 %v1474_v22, %v1403_v1  ;;  %v1491_v28 = vadd.f32 %v1475_v20, %v1416_v50  ;;  %v1492_v9 = vadd.f32 %v1476_v15, %v1429_v56 }
 0x610   : > { %v1493_v55 = vadd.f32 %v1477_v25, %v1442_v35  ;;  %v1494_v62 = vadd.f32 %v1478_v52, %v1455_v48  ;;  %v1495_v17 = vadd.f32 %v1479_v33, %v1468_v24 }
 0x611   : > { %v1504_v14 = vrot.slane %v1489_v46, 7  ;;  %v1506_v44 = vrot.slane %v1490_v59, 6  ;;  %v1508_v19 = vrot.slane %v1491_v28, 5  ;;  %v1510_v38 = vrot.slane %v1492_v9, 4 }
 0x612   : > { %v1512_v23 = vrot.slane %v1493_v55, 3  ;;  %v1514_v54 = vrot.slane %v1494_v62, 2  ;;  %v1516_v58 = vrot.slane %v1495_v17, 1 }
 0x613   : > { %v1505_v49 = vsel %vm766_vm5, %v1504_v14, %v1488_v29 }
 0x614   : > { %v1507_v45 = vsel %vm768_vm6, %v1506_v44, %v1505_v49 }
 0x615   : > { %v1509_v31 = vsel %vm770_vm7, %v1508_v19, %v1507_v45 }
 0x616   : > { %v1511_v32 = vsel %vm772_vm8, %v1510_v38, %v1509_v31 }
 0x617   : > { %v1513_v10 = vsel %vm774_vm9, %v1512_v23, %v1511_v32 }
 0x618   : > { %v1515_v37 = vsel %vm776_vm10, %v1514_v54, %v1513_v10 }
 0x619   : > { %v1517_v53 = vsel %vm778_vm11, %v1516_v58, %v1515_v37 }
 0x61a   : > { %1519 = vst.msk [vmem:[%s391_s11] sm:$0xff] %vm433_vm0, %v1517_v53 }
 0x61b   : > { %1860 = shalt.err (!%p1857_p4)
}
 0x61c   : > { %s1861_s18 = scalar_lea.hbm %s2509_s28, 128  ;;  %s1865_s11 = scalar_lea.hbm %s2565_s10, 256 }
 0x61d   : > { %p1862_p5 = scmp.ne.s32.totalorder %s2509_s28, %s1861_s18  ;;  %p1866_p1 = scmp.lt.u32.totalorder %s2509_s28, %s2565_s10 }
 0x61e   : > { %p1867_p3 = scmp.lt.u32.totalorder %s1865_s11, %s1861_s18  ;;  %p1869_p11 = scmp.lt.u32.totalorder %s1861_s18, %s2509_s28 }
 0x61f   : > { %p1863_p7 = pnand %p1862_p5, %p2605_p12 }
 0x620   : > { %p1868_p6 = por %p1867_p3, %p1866_p1 }
 0x621   : > { %p1864_p9 = pneg %p1863_p7 }
 0x622   : > { %p1870_p13 = por %p1869_p11, %p1868_p6 }
 0x624   : > { %p1871_p8 = pnand %p1870_p13, %p1864_p9 }
 0x626   : > { %1874 = shalt.err (!%p1871_p8)
}
 0x627   : > { %1765 = dma.vmem_to_hbm [thread:$0]  (%p2605_p12), %s2511_s30, 128, %s2509_s28, %s1529_s17  }
 0x628 PF: > { %s1574_s23 = sand.u32 1, %s1901_s13   ;;  %p2606_p10 = scmp.ne.s32.totalorder %s2583_s26, 0 }
 0x629   : > { %p2607_p0 = scmp.ge.s32.totalorder %s1913_s16, 2  ;;  %s1575_s22 = scalar_lea.sflag [#allocation4], %s1574_s23 }
 0x62b   : > { %p1772_p2 = pnand %p2607_p0, %p2606_p10 }
 0x62d   : > { %1896 = dma.done.wait (!%p1772_p2), %s1575_s22, 128  }
 0x62e   : > { %1898 = vsyncadd (!%p1772_p2), %s1575_s22, 4294967168  ;;  %s2608_s24 = sld [smem:[#allocation8_spill]]  ;;  %p24_p4 = scmp.ge.s32.totalorder %s2003_s19, 4  }
 0x62f   : > { %s2609_s13 = smov %s1905_s14  ;;  %s2610_s14 = smov %s1909_s15 }
 0x630   : > { %s2612_s16 = smov %s2003_s19  ;;  %26 = sbr.rel (!%p24_p4) target bundleno = 5 (0x5), region = 121 }
 0x634   : > { %s2611_s15 = smov %s2608_s24 }
 0x637   :  { %1580 = vsyncpa [#allocation3], 1 }
 0x638   :  { %1582 = vsyncpa [#allocation3 + $0x1], 1 }
 0x639   :  { %1583 = vsyncpa [#allocation4], 1 }
 0x63a   :  { %1585 = vsyncpa [#allocation4 + $0x1], 1 }

</bundles_post_ra>
